<compile_context>
chip_gen: v7x
topology: tpu7x:2x2x1
jax: 0.10.0
libtpu: 0.0.40
codegen_flags: <defaults>
</compile_context>

<pallas_src>
import jax
import jax.numpy as jnp
from jax import lax
from jax.experimental import pallas as pl
from jax.experimental.pallas import tpu as pltpu

LANE = 128
BLOCK_BYTES = 2 * 1024 * 1024        # target bytes per input block per grid step
VMEM_LIMIT_BYTES = 32 * 1024 * 1024  # 2 inputs x 2 buffers x 2 MiB + slack; OK on v5e..v7x


def _tensorcores_per_chip():
    # v7x exposes 2 TensorCores per chip; v5e/v6e have 1. Default to 1 for
    # anything unrecognized (a split is pure overhead on single-TC chips).
    try:
        kind = jax.devices()[0].device_kind.lower()
    except Exception:
        return 1
    return 2 if ("v7" in kind or "7x" in kind) else 1


def _make_kernel(rows, tm, tiles_per_split, needs_mask):
    grouped = tm % 8 == 0  # (tm,128) -> (tm//8, 8, 128) is a layout-preserving regroup

    def kernel(x_ref, y_ref, o_ref):
        i = pl.program_id(0)  # split (parallel; one per TensorCore on v7x)
        j = pl.program_id(1)  # tile within split (reduction axis)

        @pl.when(j == 0)
        def _():
            o_ref[...] = jnp.zeros_like(o_ref)

        # Inputs stream in native dtype; cast to f32 in VMEM after the DMA.
        d = x_ref[...].astype(jnp.float32) - y_ref[...].astype(jnp.float32)

        def accumulate(dsq):
            if grouped:
                # Fold (tm,128) -> (8,128) with pure VALU adds; each group of 8
                # rows is exactly one native vreg tile, so the reshape is free.
                o_ref[...] += dsq.reshape(tm // 8, 8, LANE).sum(axis=0)
            else:
                # Tiny single-tile case (rows not a multiple of 8): o_ref is
                # (1,128); one cheap sublane reduce on the otherwise-idle XLU.
                o_ref[...] += jnp.sum(dsq, axis=0, keepdims=True)

        if not needs_mask:
            accumulate(d * d)
        else:
            t = i * tiles_per_split + j  # unclamped tile index

            @pl.when((t + 1) * tm <= rows)  # fully valid tile: no mask work
            def _():
                accumulate(d * d)

            @pl.when((t + 1) * tm > rows)  # ragged last tile / clamped duplicate
            def _():
                # Mask rows beyond the true extent BEFORE squaring/accumulating
                # so out-of-bounds garbage (even NaN/Inf) contributes exactly 0.
                row_ids = t * tm + lax.broadcasted_iota(jnp.int32, (tm, LANE), 0)
                dm = jnp.where(row_ids < rows, d, 0.0)
                accumulate(dm * dm)

    return kernel


def mse_loss(logits, targets):
    """Equivalent of torch.nn.functional.mse_loss(logits.flatten(), targets.flatten())."""
    x = logits.reshape(-1)
    y = targets.reshape(-1)
    n = x.shape[0]
    assert y.shape[0] == n, "logits and targets must have the same number of elements"
    if n == 0:
        return jnp.float32(float("nan"))

    rem = n % LANE
    if rem:
        # TODO(synk): only a sub-128 lane remainder forces this O(n) pad copy;
        # lane-aligned element counts (the common ML case) never take this
        # path, and the zero padding contributes 0 while we divide by true n.
        pad = LANE - rem
        x = jnp.pad(x, (0, pad))
        y = jnp.pad(y, (0, pad))

    rows = x.shape[0] // LANE
    x2d = x.reshape(rows, LANE)  # contiguous reshape: no HBM copy
    y2d = y.reshape(rows, LANE)

    # ~2 MiB per input block per step (4096 rows f32 / 8192 rows bf16); the
    # whole array becomes a single full-extent block when smaller than that.
    itemsize = max(x2d.dtype.itemsize, y2d.dtype.itemsize)
    tm_max = BLOCK_BYTES // (LANE * itemsize)
    tm = rows if rows <= tm_max else tm_max
    num_tiles = pl.cdiv(rows, tm)

    # 2-way split only on dual-TensorCore chips (v7x); pure overhead elsewhere.
    nsplit = 2 if (num_tiles >= 2 and _tensorcores_per_chip() >= 2) else 1
    tiles_per_split = pl.cdiv(num_tiles, nsplit)
    needs_mask = (nsplit * tiles_per_split * tm) != rows
    has_dup = nsplit * tiles_per_split > num_tiles
    out_rows = 8 if tm % 8 == 0 else 1  # per-split accumulator height

    if has_dup:
        # Clamp duplicate trailing tiles of an uneven split onto the last valid
        # tile; the in-kernel row mask zeroes their contribution.
        def in_map(i, j):
            return (jnp.minimum(i * tiles_per_split + j, num_tiles - 1), 0)
    else:
        def in_map(i, j):
            return (i * tiles_per_split + j, 0)

    bytes_accessed = int(x2d.size * x2d.dtype.itemsize
                         + y2d.size * y2d.dtype.itemsize
                         + nsplit * out_rows * LANE * 4)

    partials = pl.pallas_call(
        _make_kernel(rows, tm, tiles_per_split, needs_mask),
        out_shape=jax.ShapeDtypeStruct((nsplit * out_rows, LANE), jnp.float32),
        grid_spec=pltpu.PrefetchScalarGridSpec(
            num_scalar_prefetch=0,
            grid=(nsplit, tiles_per_split),
            in_specs=[
                pl.BlockSpec((tm, LANE), in_map),
                pl.BlockSpec((tm, LANE), in_map),
            ],
            out_specs=pl.BlockSpec((out_rows, LANE), lambda i, j: (i, 0)),
        ),
        compiler_params=pltpu.CompilerParams(
            # TODO(synk): on v7x, profile pltpu.CORE_PARALLEL on the outer axis
            # (and pipeline_mode=pl.Buffered(3) on the input specs) if
            # "parallel" alone does not engage both TensorCores.
            dimension_semantics=("parallel", "arbitrary"),
            vmem_limit_bytes=VMEM_LIMIT_BYTES,
        ),
        cost_estimate=pl.CostEstimate(
            flops=3 * n, transcendentals=0, bytes_accessed=bytes_accessed),
    )(x2d, y2d)

    # Tiny cross-lane reduction (<= nsplit*8*128 floats) + mean over the true n.
    return (jnp.sum(partials) / jnp.float32(n)).astype(jnp.float32)


if __name__ == "__main__":
    key = jax.random.PRNGKey(0)

    def ref_mse(a, b):
        af = a.reshape(-1).astype(jnp.float32)
        bf = b.reshape(-1).astype(jnp.float32)
        return jnp.mean((af - bf) ** 2)

    # Primary small case consistent with the module: (batch=2, seq=8, vocab=32).
    k1, k2 = jax.random.split(key)
    logits = jax.random.normal(k1, (2, 8, 32), dtype=jnp.float32)
    targets = jax.random.normal(k2, (2, 8, 32), dtype=jnp.float32)
    loss = mse_loss(logits, targets)
    jax.block_until_ready(loss)
    assert jnp.allclose(loss, ref_mse(logits, targets), rtol=1e-5, atol=1e-6), loss

    # Single full-extent block (rows <= tm_max), multiple-of-8 rows.
    k3, k4 = jax.random.split(k1)
    a = jax.random.normal(k3, (8, 64, 512), dtype=jnp.float32)
    b = jax.random.normal(k4, (8, 64, 512), dtype=jnp.float32)
    loss2 = mse_loss(a, b)
    jax.block_until_ready(loss2)
    assert jnp.allclose(loss2, ref_mse(a, b), rtol=1e-5, atol=1e-6), loss2

    # Multi-tile with a ragged last tile (rows=5000 > 4096): mask path gated by pl.when.
    k5, k6 = jax.random.split(k2)
    c = jax.random.normal(k5, (5, 1000, 128), dtype=jnp.float32)
    d = jax.random.normal(k6, (5, 1000, 128), dtype=jnp.float32)
    loss3 = mse_loss(c, d)
    jax.block_until_ready(loss3)
    assert jnp.allclose(loss3, ref_mse(c, d), rtol=1e-5, atol=1e-6), loss3

    # Element count not a multiple of 128 (pad path) and rows not multiple of 8.
    e = jax.random.normal(k3, (3, 7, 5), dtype=jnp.float32)
    f = jax.random.normal(k4, (3, 7, 5), dtype=jnp.float32)
    loss4 = mse_loss(e, f)
    jax.block_until_ready(loss4)
    assert jnp.allclose(loss4, ref_mse(e, f), rtol=1e-5, atol=1e-6), loss4

    # bf16 inputs streamed in native dtype, cast to f32 inside the kernel.
    g = jax.random.normal(k5, (2, 16, 64), dtype=jnp.bfloat16)
    h = jax.random.normal(k6, (2, 16, 64), dtype=jnp.bfloat16)
    loss5 = mse_loss(g, h)
    jax.block_until_ready(loss5)
    assert jnp.allclose(loss5, ref_mse(g, h), rtol=1e-5, atol=1e-6), loss5

    print("KERNEL_OK")
</pallas_src>

<mosaic_0001>
module attributes {stable_mosaic.version = 11 : i64} {
  func.func @kernel(%arg0: i32, %arg1: i32, %arg2: memref<4x128xf32, #tpu.memory_space<vmem>>, %arg3: memref<4x128xf32, #tpu.memory_space<vmem>>, %arg4: memref<1x128xf32, #tpu.memory_space<vmem>>) attributes {dimension_semantics = [#tpu.dimension_semantics<parallel>, #tpu.dimension_semantics<arbitrary>], iteration_bounds = array<i64: 1, 1>, scalar_prefetch = 0 : i64, scratch_operands = 0 : i64, tpu.core_type = #tpu.core_type<tc>, window_params = [{transform_indices = @transform_0, window_bounds = array<i64: 4, 128>}, {transform_indices = @transform_1, window_bounds = array<i64: 4, 128>}, {transform_indices = @transform_2, window_bounds = array<i64: 1, 128>}]} {
    %c0_i32 = arith.constant 0 : i32
    %0 = arith.cmpi eq, %arg1, %c0_i32 : i32
    %1 = arith.extui %0 : i1 to i32
    %c0_i32_0 = arith.constant 0 : i32
    %2 = arith.cmpi ne, %1, %c0_i32_0 : i32
    scf.if %2 {
      %cst_8 = arith.constant 0.000000e+00 : f32
      %12 = vector.broadcast %cst_8 : f32 to vector<1x128xf32>
      %c0_9 = arith.constant 0 : index
      %c0_10 = arith.constant 0 : index
      %13 = vector.load %arg4[%c0_9, %c0_10] : memref<1x128xf32, #tpu.memory_space<vmem>>, vector<1x128xf32>
      tpu.vector_store %arg4[%c0_9, %c0_10], %12 {strides = array<i32>} : memref<1x128xf32, #tpu.memory_space<vmem>>, vector<1x128xf32>,
    } else {
    }
    %c0 = arith.constant 0 : index
    %c0_1 = arith.constant 0 : index
    %3 = vector.load %arg2[%c0, %c0_1] : memref<4x128xf32, #tpu.memory_space<vmem>>, vector<4x128xf32>
    %c0_2 = arith.constant 0 : index
    %c0_3 = arith.constant 0 : index
    %4 = vector.load %arg3[%c0_2, %c0_3] : memref<4x128xf32, #tpu.memory_space<vmem>>, vector<4x128xf32>
    %5 = arith.subf %3, %4 : vector<4x128xf32>
    %6 = arith.mulf %5, %5 : vector<4x128xf32>
    %c0_4 = arith.constant 0 : index
    %c0_5 = arith.constant 0 : index
    %7 = vector.load %arg4[%c0_4, %c0_5] : memref<1x128xf32, #tpu.memory_space<vmem>>, vector<1x128xf32>
    %cst = arith.constant dense<0.000000e+00> : vector<128xf32>
    %8 = vector.multi_reduction <add>, %6, %cst [0] : vector<4x128xf32> to vector<128xf32>
    %9 = vector.shape_cast %8 : vector<128xf32> to vector<1x128xf32>
    %10 = arith.addf %7, %9 : vector<1x128xf32>
    %c0_6 = arith.constant 0 : index
    %c0_7 = arith.constant 0 : index
    %11 = vector.load %arg4[%c0_6, %c0_7] : memref<1x128xf32, #tpu.memory_space<vmem>>, vector<1x128xf32>
    tpu.vector_store %arg4[%c0_6, %c0_7], %10 {strides = array<i32>} : memref<1x128xf32, #tpu.memory_space<vmem>>, vector<1x128xf32>,
    return
  }
  func.func @transform_0(%arg0: i32, %arg1: i32) -> (i32, i32) {
    %c1_i32 = arith.constant 1 : i32
    %0 = arith.muli %arg0, %c1_i32 : i32
    %1 = arith.addi %0, %arg1 : i32
    %c0_i32 = arith.constant 0 : i32
    %c0_i32_0 = arith.constant 0 : i32
    return %1, %c0_i32 : i32, i32
  }
  func.func @transform_1(%arg0: i32, %arg1: i32) -> (i32, i32) {
    %c1_i32 = arith.constant 1 : i32
    %0 = arith.muli %arg0, %c1_i32 : i32
    %1 = arith.addi %0, %arg1 : i32
    %c0_i32 = arith.constant 0 : i32
    %c0_i32_0 = arith.constant 0 : i32
    return %1, %c0_i32 : i32, i32
  }
  func.func @transform_2(%arg0: i32, %arg1: i32) -> (i32, i32) {
    %c0_i32 = arith.constant 0 : i32
    %c0_i32_0 = arith.constant 0 : i32
    return %arg0, %c0_i32 : i32, i32
  }
}

</mosaic_0001>

<bundles_post_ra>
// kernel: tpu_custom_call.1
= control target key start
LH: loop header
LB: loop body
LE: loop exit
PB: predicated region body
PF: predicated region fallthrough
CT: control target
= control target key end

     0   :  { %7 = vsyncpa [#allocation3], 0  ;;  %s211_s0 = inlined_call_operand.hbm [shape: f32[4,128], index: 0, kind: input, shape index: {}]   ;;  %s212_s1 = inlined_call_operand.hbm [shape: f32[4,128], index: 1, kind: input, shape index: {}]   ;;  %s213_s2 = inlined_call_operand.hbm [shape: f32[1,128], index: 2, kind: output, shape index: {}]  }
   0x1   :  { %8 = vsyncpa [#allocation6], 0 }
   0x2   :  { %9 = vsyncpa [#allocation4], 0  ;;  %s156_s9 = smov [#allocation2]   ;;  %s157_s11 = smov [#allocation5]  }
   0x3   :  { %s19_s10 = sshll.u32 %s156_s9, 4  ;;  %s32_s12 = sshll.u32 %s157_s11, 4  ;;  %s20_s10 = int_to_ptr.vmem [resolvable:$true] %s19_s10  ;;  %s33_s12 = int_to_ptr.vmem [resolvable:$true] %s32_s12 }
   0x4   :  { %s84_s15 = scalar_lea.hbm %s211_s0, 64 }
   0x5   :  { %p85_p0 = scmp.ne.s32.totalorder %s211_s0, %s84_s15  ;;  %p88_p1 = scmp.lt.u32.totalorder %s84_s15, %s211_s0 }
   0x7   :  { %p90_p2 = pnand %p88_p1, %p85_p0 }
   0x9   :  { %93 = shalt.err (!%p90_p2)
}
   0xa   :  { %s94_s20 = scalar_lea.vmem %s20_s10, 64  ;;  %p99_p4 = scmp.lt.s32.totalorder %s20_s10, %s20_s10 }
   0xb   :  { %p95_p3 = scmp.ne.s32.totalorder %s20_s10, %s94_s20  ;;  %p100_p5 = scmp.lt.s32.totalorder %s94_s20, %s94_s20 }
   0xd   :  { %p101_p6 = por %p100_p5, %p99_p4 }
   0xf   :  { %p102_p7 = pnand %p101_p6, %p95_p3 }
  0x11   :  { %105 = shalt.err (!%p102_p7)
}
  0x12   :  { %22 = dma.hbm_to_vmem [thread:$0]  %s211_s0, 64, %s20_s10, [#allocation3]  }
  0x13   :  { %s106_s25 = scalar_lea.hbm %s212_s1, 64 }
  0x14   :  { %p107_p8 = scmp.ne.s32.totalorder %s212_s1, %s106_s25  ;;  %p110_p9 = scmp.lt.u32.totalorder %s106_s25, %s212_s1 }
  0x16   :  { %p112_p10 = pnand %p110_p9, %p107_p8 }
  0x18   :  { %115 = shalt.err (!%p112_p10)
}
  0x19   :  { %s116_s30 = scalar_lea.vmem %s33_s12, 64  ;;  %p121_p12 = scmp.lt.s32.totalorder %s33_s12, %s33_s12 }
  0x1a   :  { %p117_p11 = scmp.ne.s32.totalorder %s33_s12, %s116_s30  ;;  %p122_p13 = scmp.lt.s32.totalorder %s116_s30, %s116_s30 }
  0x1c   :  { %p123_p0 = por %p122_p13, %p121_p12 }
  0x1e   :  { %p124_p1 = pnand %p123_p0, %p117_p11 }
  0x20   :  { %127 = shalt.err (!%p124_p1)
}
  0x21   :  { %35 = dma.hbm_to_vmem [thread:$0]  %s212_s1, 64, %s33_s12, [#allocation6]  }
  0x22   :  { %150 = dma.done.wait [#allocation3], 64  }
  0x23   :  { %151 = vsyncadd [#allocation3], 4294967232 }
  0x24   :  { %152 = dma.done.wait [#allocation6], 64  }
  0x25   :  { %153 = vsyncadd [#allocation6], 4294967232  ;;  %v158_v0 = vmov 0.0   ;;  %v49_v1 = vld [vmem:[#allocation2] sm:$0xf]  ;;  %vm54_vm0 = vcmask 1043456  }
  0x26   :  { %48 = vst [vmem:[#allocation7] sm:$0x1] %v158_v0  ;;  %v50_v2 = vld [vmem:[#allocation5] sm:$0xf]  ;;  %s159_s4 = smov [#allocation7]  }
  0x27   :  { %v51_v3 = vsub.f32 %v49_v1, %v50_v2  ;;  %s70_s1 = sshll.u32 %s159_s4, 4  ;;  %s71_s1 = int_to_ptr.vmem [resolvable:$true] %s70_s1 }
  0x28   :  { %s128_s5 = scalar_lea.vmem %s71_s1, 16  ;;  %s132_s6 = scalar_lea.vmem %s71_s1, 32 }
  0x29   :  { %v52_v4 = vmul.f32 %v51_v3, %v51_v3  ;;  %p129_p2 = scmp.ne.s32.totalorder %s71_s1, %s128_s5  ;;  %p133_p3 = scmp.lt.s32.totalorder %s71_s1, %s71_s1 }
  0x2a   :  { %p134_p4 = scmp.lt.s32.totalorder %s132_s6, %s128_s5 }
  0x2b   :  { %v55_v5 = vsel %vm54_vm0, %v52_v4, 0.0 }
  0x2c   :  { %v56_v6 = vrot.slane %v55_v5, 4  ;;  %p135_p5 = por %p134_p4, %p133_p3 }
  0x2d   :  { %v53_v11 = vld [vmem:[#allocation7] sm:$0x1] }
  0x2e   :  { %v57_v7 = vadd.f32 %v56_v6, %v55_v5  ;;  %p136_p6 = pnand %p135_p5, %p129_p2 }
  0x30   :  { %v58_v8 = vrot.slane %v57_v7, 2 }
  0x32   :  { %v59_v9 = vadd.f32 %v58_v8, %v57_v7 }
  0x34   :  { %v60_v10 = vrot.slane %v59_v9, 1 }
  0x36   :  { %v61_v12 = vadd.f32 %v60_v10, %v59_v9 }
  0x38   :  { %v62_v13 = vadd.f32 %v61_v12, %v53_v11 }
  0x3a   :  { %63 = vst [vmem:[#allocation7] sm:$0x1] %v62_v13 }
  0x3b   :  { %139 = shalt.err (!%p136_p6)
}
  0x3c   :  { %s140_s9 = scalar_lea.hbm %s213_s2, 16 }
  0x3d   :  { %p141_p7 = scmp.ne.s32.totalorder %s213_s2, %s140_s9  ;;  %p144_p8 = scmp.lt.u32.totalorder %s140_s9, %s213_s2 }
  0x3f   :  { %p146_p9 = pnand %p144_p8, %p141_p7 }
  0x41   :  { %149 = shalt.err (!%p146_p9)
}
  0x42   :  { %73 = dma.vmem_to_hbm [thread:$0]  %s71_s1, 16, %s213_s2, [#allocation4]  }
  0x43   :  { %154 = dma.done.wait [#allocation4], 16  }
  0x44   :  { %155 = vsyncadd [#allocation4], 4294967280 }
  0x45   :  { %77 = vsyncpa [#allocation3], 1 }
  0x46   :  { %78 = vsyncpa [#allocation6], 1 }
  0x47   :  { %79 = vsyncpa [#allocation4], 1 }

</bundles_post_ra>
